<compile_context>
chip_gen: v7x
topology: tpu7x:2x2x1
jax: 0.10.0
libtpu: 0.0.40
codegen_flags: <defaults>
</compile_context>

<pallas_src>
import jax
import jax.numpy as jnp
from jax.experimental import pallas as pl
from jax.experimental.pallas import tpu as pltpu


def _round_up(a: int, b: int) -> int:
    return ((a + b - 1) // b) * b


def agent_kernel(xt_ref, w1_ref, b1_ref, w2_ref, b2_ref, ot_ref):
    # Transposed formulation (batch on lanes):
    #   h.T = relu(W1 @ x.T + b1[:, None])   -> (nh, TILE_N)
    #   y.T = W2 @ h.T + b2[:, None]         -> (out_sz, TILE_N)
    h = jnp.dot(w1_ref[...], xt_ref[...], preferred_element_type=jnp.float32)
    h = jnp.maximum(h + b1_ref[...], 0.0)
    o = jnp.dot(w2_ref[...], h, preferred_element_type=jnp.float32)
    ot_ref[...] = (o + b2_ref[...]).astype(ot_ref.dtype)


def agent_forward(x, w1, b1, w2, b2, *, tile_n: int = 1024):
    """y = relu(x @ w1.T + b1) @ w2.T + b2  (PyTorch nn.Linear weight layout).

    x:  (..., in_sz)
    w1: (nh, in_sz)    b1: (nh,)
    w2: (out_sz, nh)   b2: (out_sz,)
    Returns (..., out_sz).
    """
    in_sz = x.shape[-1]
    lead = x.shape[:-1]
    nh = w1.shape[0]
    out_sz = w2.shape[0]

    # Flatten all leading dims into one big row axis (amortize the launch).
    x2 = x.reshape(-1, in_sz)
    n = x2.shape[0]

    # Pad the row count to a lane-friendly multiple of the tile size.
    n_pad = _round_up(max(n, 1), 128)
    tile = min(tile_n, n_pad)
    n_pad = _round_up(n_pad, tile)

    # Layout plumbing only: put the batch axis last (lanes) so every kernel
    # load/store is lane-dense.  Cheap wrapper-side data movement.
    x_t = x2.T                                   # (in_sz, n)
    if n_pad != n:
        x_t = jnp.pad(x_t, ((0, 0), (0, n_pad - n)))
    b1c = b1.reshape(nh, 1)
    b2c = b2.reshape(out_sz, 1)

    grid = (n_pad // tile,)

    out_t = pl.pallas_call(
        agent_kernel,
        out_shape=jax.ShapeDtypeStruct((out_sz, n_pad), x.dtype),
        grid=grid,
        in_specs=[
            pl.BlockSpec((in_sz, tile), lambda i: (0, i)),   # x.T row tile (streams)
            pl.BlockSpec((nh, in_sz), lambda i: (0, 0)),     # W1  (VMEM-resident)
            pl.BlockSpec((nh, 1), lambda i: (0, 0)),         # b1  (VMEM-resident)
            pl.BlockSpec((out_sz, nh), lambda i: (0, 0)),    # W2  (VMEM-resident)
            pl.BlockSpec((out_sz, 1), lambda i: (0, 0)),     # b2  (VMEM-resident)
        ],
        out_specs=pl.BlockSpec((out_sz, tile), lambda i: (0, i)),  # lane-dense stores
        compiler_params=pltpu.CompilerParams(
            dimension_semantics=("parallel",),   # megacore split on v7x
        ),
    )(x_t, w1, b1c, w2, b2c)

    # Drop row padding, restore row-major (..., out_sz).
    return out_t[:, :n].T.reshape(*lead, out_sz)


def init_params(key, in_sz, nh, out_sz, dtype=jnp.float32):
    """PyTorch-style nn.Linear init, PyTorch weight layout (out, in)."""
    k1, k2, k3, k4 = jax.random.split(key, 4)
    bound1 = 1.0 / jnp.sqrt(in_sz)
    bound2 = 1.0 / jnp.sqrt(nh)
    w1 = jax.random.uniform(k1, (nh, in_sz), dtype, -bound1, bound1)
    b1 = jax.random.uniform(k2, (nh,), dtype, -bound1, bound1)
    w2 = jax.random.uniform(k3, (out_sz, nh), dtype, -bound2, bound2)
    b2 = jax.random.uniform(k4, (out_sz,), dtype, -bound2, bound2)
    return w1, b1, w2, b2


if __name__ == "__main__":
    # Module-consistent feature sizes; many (timestep, env) rows per launch.
    in_sz, nh, out_sz = 16, 32, 4
    T, B = 64, 8                     # 512 rows total

    key = jax.random.PRNGKey(0)
    kx, kp = jax.random.split(key)
    x = jax.random.normal(kx, (T, B, in_sz), jnp.float32)
    w1, b1, w2, b2 = init_params(kp, in_sz, nh, out_sz)

    # tile_n=128 -> grid of 4 row tiles, exercising the streaming pipeline.
    fwd = jax.jit(lambda *a: agent_forward(*a, tile_n=128))
    out = fwd(x, w1, b1, w2, b2)
    jax.block_until_ready(out)

    # Reference: identical math to the PyTorch module's forward.
    ref = jnp.maximum(x @ w1.T + b1, 0.0) @ w2.T + b2
    assert out.shape == (T, B, out_sz), out.shape
    assert jnp.allclose(out, ref, atol=1e-4, rtol=1e-4), float(
        jnp.max(jnp.abs(out - ref))
    )

    print("KERNEL_OK")
</pallas_src>

<mosaic_0001>
module attributes {stable_mosaic.version = 11 : i64} {
  func.func @agent_kernel(%arg0: i32, %arg1: memref<16x128xf32, #tpu.memory_space<vmem>>, %arg2: memref<32x16xf32, #tpu.memory_space<vmem>>, %arg3: memref<32x1xf32, #tpu.memory_space<vmem>>, %arg4: memref<4x32xf32, #tpu.memory_space<vmem>>, %arg5: memref<4x1xf32, #tpu.memory_space<vmem>>, %arg6: memref<4x128xf32, #tpu.memory_space<vmem>>) attributes {dimension_semantics = [#tpu.dimension_semantics<parallel>], iteration_bounds = array<i64: 4>, scalar_prefetch = 0 : i64, scratch_operands = 0 : i64, tpu.core_type = #tpu.core_type<tc>, window_params = [{transform_indices = @transform_0, window_bounds = array<i64: 16, 128>}, {pipeline_mode = #tpu.pipeline_mode<synchronous>, transform_indices = @transform_1, window_bounds = array<i64: 32, 16>}, {pipeline_mode = #tpu.pipeline_mode<synchronous>, transform_indices = @transform_2, window_bounds = array<i64: 32, 1>}, {pipeline_mode = #tpu.pipeline_mode<synchronous>, transform_indices = @transform_3, window_bounds = array<i64: 4, 32>}, {pipeline_mode = #tpu.pipeline_mode<synchronous>, transform_indices = @transform_4, window_bounds = array<i64: 4, 1>}, {transform_indices = @transform_5, window_bounds = array<i64: 4, 128>}]} {
    %c0 = arith.constant 0 : index
    %c0_0 = arith.constant 0 : index
    %0 = vector.load %arg2[%c0, %c0_0] : memref<32x16xf32, #tpu.memory_space<vmem>>, vector<32x16xf32>
    %c0_1 = arith.constant 0 : index
    %c0_2 = arith.constant 0 : index
    %1 = vector.load %arg1[%c0_1, %c0_2] : memref<16x128xf32, #tpu.memory_space<vmem>>, vector<16x128xf32>
    %cst = arith.constant dense<0.000000e+00> : vector<32x128xf32>
    %2 = tpu.matmul %0, %1, %cst {dimension_numbers = #tpu.dot_dimension_numbers<[1], [0], [0], [1], [0, 0, 1, 1], [], []>} : vector<32x16xf32>, vector<16x128xf32>, vector<32x128xf32> -> vector<32x128xf32>
    %c0_3 = arith.constant 0 : index
    %c0_4 = arith.constant 0 : index
    %3 = vector.load %arg3[%c0_3, %c0_4] : memref<32x1xf32, #tpu.memory_space<vmem>>, vector<32x1xf32>
    %4 = vector.broadcast %3 : vector<32x1xf32> to vector<32x128xf32>
    %5 = arith.addf %2, %4 : vector<32x128xf32>
    %cst_5 = arith.constant 0.000000e+00 : f32
    %6 = vector.broadcast %cst_5 : f32 to vector<32x128xf32>
    %7 = arith.maximumf %5, %6 : vector<32x128xf32>
    %c0_6 = arith.constant 0 : index
    %c0_7 = arith.constant 0 : index
    %8 = vector.load %arg4[%c0_6, %c0_7] : memref<4x32xf32, #tpu.memory_space<vmem>>, vector<4x32xf32>
    %cst_8 = arith.constant dense<0.000000e+00> : vector<4x128xf32>
    %9 = tpu.matmul %8, %7, %cst_8 {dimension_numbers = #tpu.dot_dimension_numbers<[1], [0], [0], [1], [0, 0, 1, 1], [], []>} : vector<4x32xf32>, vector<32x128xf32>, vector<4x128xf32> -> vector<4x128xf32>
    %c0_9 = arith.constant 0 : index
    %c0_10 = arith.constant 0 : index
    %10 = vector.load %arg5[%c0_9, %c0_10] : memref<4x1xf32, #tpu.memory_space<vmem>>, vector<4x1xf32>
    %11 = vector.broadcast %10 : vector<4x1xf32> to vector<4x128xf32>
    %12 = arith.addf %9, %11 : vector<4x128xf32>
    %c0_11 = arith.constant 0 : index
    %c0_12 = arith.constant 0 : index
    %13 = vector.load %arg6[%c0_11, %c0_12] : memref<4x128xf32, #tpu.memory_space<vmem>>, vector<4x128xf32>
    tpu.vector_store %arg6[%c0_11, %c0_12], %12 {strides = array<i32>} : memref<4x128xf32, #tpu.memory_space<vmem>>, vector<4x128xf32>,
    return
  }
  func.func @transform_0(%arg0: i32) -> (i32, i32) {
    %c0_i32 = arith.constant 0 : i32
    %c0_i32_0 = arith.constant 0 : i32
    return %c0_i32, %arg0 : i32, i32
  }
  func.func @transform_1(%arg0: i32) -> (i32, i32) {
    %c0_i32 = arith.constant 0 : i32
    %c0_i32_0 = arith.constant 0 : i32
    %c0_i32_1 = arith.constant 0 : i32
    return %c0_i32, %c0_i32_0 : i32, i32
  }
  func.func @transform_2(%arg0: i32) -> (i32, i32) {
    %c0_i32 = arith.constant 0 : i32
    %c0_i32_0 = arith.constant 0 : i32
    %c0_i32_1 = arith.constant 0 : i32
    return %c0_i32, %c0_i32_0 : i32, i32
  }
  func.func @transform_3(%arg0: i32) -> (i32, i32) {
    %c0_i32 = arith.constant 0 : i32
    %c0_i32_0 = arith.constant 0 : i32
    %c0_i32_1 = arith.constant 0 : i32
    return %c0_i32, %c0_i32_0 : i32, i32
  }
  func.func @transform_4(%arg0: i32) -> (i32, i32) {
    %c0_i32 = arith.constant 0 : i32
    %c0_i32_0 = arith.constant 0 : i32
    %c0_i32_1 = arith.constant 0 : i32
    return %c0_i32, %c0_i32_0 : i32, i32
  }
  func.func @transform_5(%arg0: i32) -> (i32, i32) {
    %c0_i32 = arith.constant 0 : i32
    %c0_i32_0 = arith.constant 0 : i32
    return %c0_i32, %arg0 : i32, i32
  }
}

</mosaic_0001>

<bundles_post_ra>
// kernel: _lambda_.1
= control target key start
LH: loop header
LB: loop body
LE: loop exit
PB: predicated region body
PF: predicated region fallthrough
CT: control target
= control target key end

     0   :  { %s680_s18 = smov 0   ;;  %s682_s19 = smov 0   ;;  %s768_s0 = inlined_call_operand.vmem [shape: f32[16,512], index: 0, kind: input, shape index: {}]   ;;  %s769_s1 = inlined_call_operand.vmem [shape: f32[32,16], index: 1, kind: input, shape index: {}]   ;;  %s770_s2 = inlined_call_operand.vmem [shape: f32[32,1], index: 2, kind: input, shape index: {}]   ;;  %s771_s3 = inlined_call_operand.vmem [shape: f32[4,32], index: 3, kind: input, shape index: {}]   ;;  %s772_s4 = inlined_call_operand.vmem [shape: f32[4,1], index: 4, kind: input, shape index: {}]   ;;  %s773_s5 = inlined_call_operand.vmem [shape: f32[4,512], index: 5, kind: output, shape index: {}]  }
   0x1   :  { %s684_s20 = smov 0  }
   0x2 LB: > { %s534_s21 = sadd.s32 4294967295, %s644_s20   ;;  %s697_s22 = sadd.s32 1, %s644_s20   ;;  %s644_s20 = sphi %s684_s20, %s776_s20   ;;  %s640_s19 = sphi %s682_s19, %s775_s19   ;;  %s636_s18 = sphi %s680_s18, %s774_s18  }
   0x3   : > { %s19_s23 = ssub.s32 %s644_s20, %s697_s22  ;;  %s22_s24 = sadd.s32 1, %s640_s19 }
   0x4   : > { %p20_p0 = scmp.eq.s32.totalorder %s19_s23, 0  ;;  %p29_p1 = scmp.ne.s32.totalorder %s640_s19, %s636_s18 }
   0x5   : > { %p30_p2 = scmp.eq.s32.totalorder %s644_s20, 0  ;;  %p537_p4 = scmp.ge.s32.totalorder %s644_s20, 4 }
   0x6   : > { %s706_s25 = scalar_select %p20_p0, %s640_s19, %s22_s24  }
   0x7   : > { %p31_p3 = por %p30_p2, %p29_p1  ;;  %177 = sbr.rel (%p537_p4) target bundleno = 21 (0x15), region = 32 }
   0xe   : > { %180 = sbr.rel (!%p31_p3) target bundleno = 21 (0x15), region = 36  ;;  %s182_s26 = sand.u32 (%p31_p3), 1, %s640_s19  }
   0xf   : > { %s539_s27 = sshll.u32 (%p31_p3), %s644_s20, 3  ;;  %s538_s28 = sshll.u32 (%p31_p3), %s182_s26, 4 }
  0x10   : > { %s186_s6 = scalar_lea.vmem (%p31_p3), %s768_s0, %s539_s27  ;;  %s184_s7 = scalar_lea.vmem (%p31_p3), [#allocation2], %s538_s28 }
  0x11   : > { %v216_v0 = vld [vmem:[%s186_s6] sm:$0xff] (%p31_p3) }
  0x12   : > { %v218_v1 = vld [vmem:[%s186_s6 + $0x20] sm:$0xff] (%p31_p3)  ;;  %217 = vst [vmem:[%s184_s7] sm:$0xff] (%p31_p3), %v216_v0 }
  0x13   : > { %219 = vst [vmem:[%s184_s7 + $0x8] sm:$0xff] (%p31_p3), %v218_v1 }
  0x15 PF: > { %p540_p5 = scmp.ge.s32.totalorder %s644_s20, 1  ;;  %p224_p6 = scmp.lt.s32.totalorder %s644_s20, 5 }
  0x17   : > { %p225_p7 = pnand %p540_p5, %p224_p6 }
  0x18   : > { %s231_s8 = sand.u32 (!%p225_p7), 1, %s636_s18   ;;  %v261_v2 = vld [vmem:[%s769_s1] sm:$0xff] (!%p225_p7)  ;;  %vm291_vm0 = vcmask (!%p225_p7), 130048   ;;  %v646_v3 = vmov (!%p225_p7), 0   ;;  %v269_v5 = vld [vmem:[%s770_s2 + $0x10] sm:$0xff] (!%p225_p7)  ;;  %v268_v8 = vld [vmem:[%s770_s2 + $0x8] sm:$0xff] (!%p225_p7) }
  0x19   : > { %228 = sbr.rel (%p225_p7) target bundleno = 475 (0x1db), region = 74  ;;  %s541_s11 = sshll.u32 (!%p225_p7), %s231_s8, 4  ;;  %565 = vmatprep.mubr.msk.f32.mxu0 (!%p225_p7), %vm291_vm0, %v261_v2  ;;  %620 = vset.pattern.permute.xlu0 (!%p225_p7), %v646_v3  ;;  %v267_v4 = vld [vmem:[%s770_s2] sm:$0xff] (!%p225_p7)  ;;  %v270_v10 = vld [vmem:[%s770_s2 + $0x18] sm:$0xff] (!%p225_p7)  ;;  %v262_v11 = vld [vmem:[%s769_s1 + $0x8] sm:$0xff] (!%p225_p7)  ;;  %v647_v15 = vmov (!%p225_p7), 0.0|0.0  }
  0x1a   : > { %273 = vperm.xlu0 (!%p225_p7), %620, %v267_v4   ;;  %621 = vset.pattern.permute.xlu1 (!%p225_p7), %v646_v3  ;;  %s233_s16 = scalar_lea.vmem (!%p225_p7), [#allocation2], %s541_s11  ;;  %v394_v12 = vld [vmem:[%s772_s4] sm:$0xf] (!%p225_p7)  ;;  %v263_v13 = vld [vmem:[%s769_s1 + $0x10] sm:$0xff] (!%p225_p7)  ;;  %v264_v14 = vld [vmem:[%s769_s1 + $0x18] sm:$0xff] (!%p225_p7)  ;;  %vm648_vm1 = vmmov (!%p225_p7), 0  }
  0x1b   : > { %v265_v6 = vld [vmem:[%s233_s16] sm:$0xff] (!%p225_p7)  ;;  %v266_v7 = vld [vmem:[%s233_s16 + $0x8] sm:$0xff] (!%p225_p7)  ;;  %283 = vperm.xlu1 (!%p225_p7), %621, %v269_v5   ;;  %586 = vmatprep.subr.bf16.mxu1 (!%p225_p7), %v647_v15  ;;  %v649_v16 = vmov (!%p225_p7), 0.0   ;;  %vm400_vm2 = vcmask (!%p225_p7), 261120   ;;  %p257_p8 = scmp.lt.s32.totalorder (!%p225_p7), %s534_s21, 3 }
  0x1c   : > { %v582_v9 = vpack.c.bf16 (!%p225_p7), %v266_v7, %v265_v6  ;;  %579 = vmatprep.mubr.msk.f32.mxu1 (!%p225_p7), %vm648_vm1, %v649_v16  ;;  %v393_v35 = vld [vmem:[%s771_s3] sm:$0xf] (!%p225_p7) }
  0x1e   : > { %583 = vmatprep.subr.bf16.mxu0 (!%p225_p7), %v582_v9  ;;  %278 = vperm.xlu0 (!%p225_p7), %620, %v268_v8  }
  0x1f   : > { %585 = vmatpush3.bf16.msra.mxu0 (!%p225_p7), %v582_v9  ;;  %288 = vperm.xlu1 (!%p225_p7), %621, %v270_v10  }
  0x20   : > { %s778_s21 = smov (!%p257_p8, %s534_s21), 3 }
  0x21   : > { %s542_s11 = sshll.u32 %s778_s21, 2 }
  0x22   : > { %566 = vmatmul.mubr.msk.f32.vlgmr.msra.gmra.mrb[0].mxu0 %vm291_vm0, %v262_v11  ;;  %397 = vperm.xlu0 %620, %v394_v12   ;;  %s260_s14 = scalar_lea.vmem %s773_s5, %s542_s11 }
  0x23   : > { %568 = vmatprep.mubr.msk.f32.mxu0 %vm291_vm0, %v263_v13 }
  0x26   : > { %569 = vmatmul.mubr.msk.f32.gmra.mrb[2].mxu0 %vm291_vm0, %v264_v14 }
  0x99   : > { %v274_v17 = vpop.permute.xlu0 %273 }
  0x9a   : > { %v284_v18 = vpop.permute.xlu1 %283 }
  0x9d   : > { %v279_v19 = vpop.permute.xlu0 %278 }
  0x9e   : > { %v289_v25 = vpop.permute.xlu1 %288 }
  0xa1   : > { %v398_v36 = vpop.permute.xlu0 %397 }
  0xf5   : > { %v567_v20 = vpop.f32.mrb[0].mxu0 }
  0xf6   : > { %v376_v21 = vadd.f32 %v567_v20, %v279_v19  ;;  %v370_v22 = vpop.f32.mrb[1].mxu0 }
  0xf7   : > { %v371_v23 = vadd.f32 %v370_v22, %v274_v17 }
  0xf8   : > { %v390_v24 = vmax.f32 %v376_v21, 0.0 }
  0xf9   : > { %v389_v26 = vmax.f32 %v371_v23, 0.0  ;;  %v570_v27 = vpop.f32.mrb[2].mxu0 }
  0xfa   : > { %v386_v28 = vadd.f32 %v570_v27, %v289_v25  ;;  %v380_v29 = vpop.f32.mrb[3].mxu0 }
  0xfb   : > { %v381_v30 = vadd.f32 %v380_v29, %v284_v18  ;;  %v587_v31 = vpack.c.bf16 %v390_v24, %v389_v26 }
  0xfc   : > { %v392_v32 = vmax.f32 %v386_v28, 0.0 }
  0xfd   : > { %v391_v33 = vmax.f32 %v381_v30, 0.0  ;;  %588 = vmatpush3.bf16.msra.mxu1 %v587_v31 }
  0xfe   : > { %589 = vmatprep.subr.bf16.mxu1 %v647_v15 }
  0xff   : > { %v590_v34 = vpack.c.bf16 %v392_v32, %v391_v33 }
 0x101   : > { %591 = vmatpush3.bf16.msra.mxu1 %v590_v34 }
 0x104   : > { %580 = vmatmul.mubr.msk.f32.vlgmr.msra.gmra.mrb[0].mxu1 %vm400_vm2, %v393_v35 }
 0x1d7   : > { %v470_v37 = vpop.f32.mrb[0].mxu1 }
 0x1d8   : > { %v471_v38 = vadd.f32 %v470_v37, %v398_v36  ;;  %v581_v39 = vpop.f32.mrb[1].mxu1 }
 0x1da   : > { %474 = vst [vmem:[%s260_s14] sm:$0xf] %v471_v38 }
 0x1db PF: > { %p12_p9 = scmp.ge.s32.totalorder %s697_s22, 6   ;;  %s774_s18 = smov %s640_s19 }
 0x1dc   : > { %s775_s19 = smov %s706_s25  ;;  %s776_s20 = smov %s697_s22 }
 0x1dd   :  { %14 = sbr.rel (!%p12_p9) target bundleno = 2 (0x2), region = 113 }

</bundles_post_ra>
